<compile_context>
chip_gen: v7x
topology: tpu7x:2x2x1
jax: 0.10.0
libtpu: 0.0.40
codegen_flags: <defaults>
</compile_context>

<pallas_src>
import functools

import jax
import jax.numpy as jnp
from jax import lax
from jax.experimental import pallas as pl
from jax.experimental.pallas import tpu as pltpu


def _round_up(x, m):
    return ((x + m - 1) // m) * m


def _divisors(n):
    ds = set()
    i = 1
    while i * i <= n:
        if n % i == 0:
            ds.add(i)
            ds.add(n // i)
        i += 1
    return sorted(ds)


def _chip_generation():
    """Best-effort TPU generation (5 / 6 / 7 ...); 0 if unknown."""
    try:
        kind = jax.devices()[0].device_kind.lower()
    except Exception:
        return 0
    for g in (7, 6, 5, 4, 3, 2):
        if f"v{g}" in kind or f"tpu{g}" in kind or f"tpu {g}" in kind:
            return g
    return 0


def _vmem_capacity_bytes(gen):
    try:
        return int(pltpu.get_tpu_info().vmem_capacity_bytes)
    except Exception:
        # v7x: 64 MiB / TensorCore; v5e/v6e: 128 MiB. Unknown -> assume small.
        return (64 if (gen >= 7 or gen == 0) else 128) * 1024 * 1024


def gradnet_kernel(x_ref, w1_ref, bw_ref, grad_ref, acc_ref, *, ew_dtype):
    """One (batch-tile, H-tile) step of d( sum(tanh(x@W1+b1)@W2+b2) ) / dx.

    x_ref    : (TB, D)  input tile, native dtype (cast to bf16 here)
    w1_ref   : (D, TH)  bf16 W1 column block
    bw_ref   : (2, TH)  f32 rows: [b1 ; W2.sum(axis=1)]
    grad_ref : (TB, D)  output gradient tile (x.dtype)
    acc_ref  : (TB, D)  f32 accumulator scratch (persists across the H axis)
    """
    h = pl.program_id(1)

    @pl.when(h == 0)
    def _init():
        acc_ref[...] = jnp.zeros_like(acc_ref)

    x = x_ref[...].astype(jnp.bfloat16)        # in-kernel cast: no wrapper HBM pass
    w1 = w1_ref[...]                           # (D, TH) bf16
    bw = bw_ref[...]                           # (2, TH) f32

    # forward pre-activation (MXU, f32 accumulate)
    pre = jnp.dot(x, w1, preferred_element_type=jnp.float32) + bw[0:1, :]

    # tanh backward. Keep 1 - t*t in f32 (bf16 cancellation near |t|~1 loses the
    # derivative); the remaining multiply runs in bf16 on v6e/v7x (bf16 VPU).
    t = jnp.tanh(pre)
    dt = 1.0 - t * t                           # f32
    g = dt.astype(ew_dtype) * bw[1:2, :].astype(ew_dtype)

    # backward matmul: dL/dx += g @ W1^T, contracted over H (dim 1 of both).
    # MXU takes the transposed operand natively — no XLU transpose of W1.
    acc_ref[...] += lax.dot_general(
        g.astype(jnp.bfloat16), w1,
        dimension_numbers=(((1,), (1,)), ((), ())),
        preferred_element_type=jnp.float32,
    )

    @pl.when(h == pl.num_programs(1) - 1)
    def _finalize():
        grad_ref[...] = acc_ref[...].astype(grad_ref.dtype)


def _vmem_estimate_bytes(tb, d, th, x_bytes, out_bytes):
    return (2 * tb * d * x_bytes        # x tile (double-buffered)
            + 2 * d * th * 2            # W1 block (bf16, worst-case 2 buffers)
            + 2 * 8 * th * 4            # fused (2, TH) b1/w2sum (sublane-padded)
            + 2 * tb * d * out_bytes    # grad output tile
            + tb * d * 4                # f32 accumulator scratch
            + 5 * tb * th * 4)          # pre / t / dt / g temporaries headroom


def gradnet_forward(x, w1, b1, w2):
    """Fused analytic dL/dx for net(x) = tanh(x@W1+b1)@W2+b2 (GradNet forward)."""
    B, D = x.shape
    H = w1.shape[1]
    out_dtype = x.dtype
    x_bytes = x.dtype.itemsize
    out_bytes = jnp.dtype(out_dtype).itemsize

    gen = _chip_generation()
    ew_dtype = jnp.bfloat16 if gen >= 6 else jnp.float32   # v5e: no bf16 VPU/EUP

    Hp = _round_up(H, 128)          # lane-dense weight columns (one-time prep)

    vmem_cap = _vmem_capacity_bytes(gen)
    budget = min(int(vmem_cap * 0.7), 100 * 1024 * 1024)

    # ---- batch tile selection ----
    Bp8 = _round_up(B, 8)
    tb = min(1024, Bp8)
    # v7x has 2 TensorCores: under dimension_semantics=("parallel", ...) make
    # sure the batch axis has >= 2 steps whenever the batch is big enough.
    if gen >= 7 and Bp8 >= 256:
        tb = min(tb, _round_up((Bp8 + 1) // 2, 8))
    # keep the per-tile x/grad/acc streams within ~1/4 of the VMEM budget,
    # but never shrink below 128 rows (keep the MXU's M dimension fed)
    while tb > 128 and (2 * tb * D * x_bytes + 2 * tb * D * out_bytes
                        + tb * D * 4) > budget // 4:
        tb = max(128, _round_up(tb // 2, 8))

    # ---- H tile: largest multiple of 128 that divides Hp and fits VMEM ----
    th_candidates = sorted((128 * m for m in _divisors(Hp // 128)), reverse=True)
    th = 128
    for cand in th_candidates:
        if _vmem_estimate_bytes(tb, D, cand, x_bytes, out_bytes) <= budget:
            th = cand
            break
    # if even TH=128 overflows, shrink tb further (floor at 128 rows)
    while tb > 128 and _vmem_estimate_bytes(tb, D, th, x_bytes, out_bytes) > budget:
        tb = max(128, _round_up(tb // 2, 8))

    Bp = _round_up(B, tb)
    nb, nh = Bp // tb, Hp // th

    # ---- one-time operand prep (weights only; x keeps native dtype / feature dim) ----
    xp = x if Bp == B else jnp.pad(x, ((0, Bp - B), (0, 0)))
    w1p = w1.astype(jnp.bfloat16)
    if Hp != H:
        w1p = jnp.zeros((D, Hp), jnp.bfloat16).at[:, :H].set(w1p)
    bw = jnp.zeros((2, Hp), jnp.float32)
    bw = bw.at[0, :H].set(b1.reshape(-1).astype(jnp.float32))
    bw = bw.at[1, :H].set(w2.sum(axis=1).reshape(-1).astype(jnp.float32))
    # padded H columns: W1=0 -> pre=0 -> dt=1, but w2sum=0 -> g=0 -> contribute 0.

    est = _vmem_estimate_bytes(tb, D, th, x_bytes, out_bytes)
    hard_cap = (48 if vmem_cap <= 64 * 1024 * 1024 else 100) * 1024 * 1024
    vmem_limit = int(min(max(2 * est, 32 * 1024 * 1024), hard_cap))

    cost = pl.CostEstimate(
        flops=4 * Bp * D * Hp,                     # forward + backward matmul
        transcendentals=Bp * Hp,                   # tanh
        bytes_accessed=(Bp * D * x_bytes + D * Hp * 2 + 2 * Hp * 4
                        + Bp * D * out_bytes),
    )

    kernel = functools.partial(gradnet_kernel, ew_dtype=ew_dtype)

    def build(single_buffer_weights):
        # Grid-invariant weight blocks (nh == 1) don't need the default second
        # pipeline buffer; reclaiming it matters most on v7x's 64 MiB VMEM.
        extra = {"pipeline_mode": pl.Buffered(1)} if single_buffer_weights else {}
        return pl.pallas_call(
            kernel,
            out_shape=jax.ShapeDtypeStruct((Bp, D), out_dtype),
            grid_spec=pltpu.PrefetchScalarGridSpec(
                num_scalar_prefetch=0,
                grid=(nb, nh),
                in_specs=[
                    pl.BlockSpec((tb, D), lambda i, h: (i, 0)),            # x tile
                    pl.BlockSpec((D, th), lambda i, h: (0, h), **extra),   # W1 block
                    pl.BlockSpec((2, th), lambda i, h: (0, h), **extra),   # b1/w2sum
                ],
                out_specs=pl.BlockSpec((tb, D), lambda i, h: (i, 0)),
                scratch_shapes=[pltpu.VMEM((tb, D), jnp.float32)],
            ),
            compiler_params=pltpu.CompilerParams(
                dimension_semantics=("parallel", "arbitrary"),
                vmem_limit_bytes=vmem_limit,
            ),
            cost_estimate=cost,
        )

    try:
        grad_p = build(single_buffer_weights=(nh == 1))(xp, w1p, bw)
    except Exception:
        # pipeline_mode=pl.Buffered(1) not supported on this jax/Mosaic build —
        # fall back to default double buffering (correctness unaffected).
        grad_p = build(single_buffer_weights=False)(xp, w1p, bw)

    return grad_p if Bp == B else grad_p[:B]


if __name__ == "__main__":
    # small shapes consistent with the MLP net: batch=8, in=32, hidden=64, out=16
    B, D, H, O = 8, 32, 64, 16

    key = jax.random.PRNGKey(0)
    kx, kw1, kb1, kw2, kb2 = jax.random.split(key, 5)
    x = jax.random.normal(kx, (B, D), dtype=jnp.float32)
    w1 = jax.random.normal(kw1, (D, H), dtype=jnp.float32) * 0.1
    b1 = jax.random.normal(kb1, (H,), dtype=jnp.float32) * 0.1
    w2 = jax.random.normal(kw2, (H, O), dtype=jnp.float32) * 0.1
    b2 = jax.random.normal(kb2, (O,), dtype=jnp.float32) * 0.1

    grad_x = jax.block_until_ready(gradnet_forward(x, w1, b1, w2))

    # reference: exactly what GradNet does (autodiff of out.sum() w.r.t. x)
    def net_sum(xx):
        return (jnp.tanh(xx @ w1 + b1) @ w2 + b2).sum()

    ref = jax.grad(net_sum)(x)

    assert grad_x.shape == x.shape and grad_x.dtype == x.dtype
    # bf16 MXU operands + f32 accumulation -> relaxed tolerance vs f32 autodiff
    assert jnp.allclose(grad_x, ref, atol=3e-2, rtol=3e-2), "mismatch vs autodiff"
    print("KERNEL_OK")
</pallas_src>

<mosaic_0001>
module attributes {stable_mosaic.version = 11 : i64} {
  func.func @gradnet_kernel(%arg0: i32, %arg1: i32, %arg2: memref<8x32xf32, #tpu.memory_space<vmem>>, %arg3: memref<32x128xbf16, #tpu.memory_space<vmem>>, %arg4: memref<2x128xf32, #tpu.memory_space<vmem>>, %arg5: memref<8x32xf32, #tpu.memory_space<vmem>>, %arg6: memref<8x32xf32, #tpu.memory_space<vmem>>) attributes {dimension_semantics = [#tpu.dimension_semantics<parallel>, #tpu.dimension_semantics<arbitrary>], iteration_bounds = array<i64: 1, 1>, scalar_prefetch = 0 : i64, scratch_operands = 1 : i64, tpu.core_type = #tpu.core_type<tc>, window_params = [{transform_indices = @transform_0, window_bounds = array<i64: 8, 32>}, {pipeline_mode = #tpu.pipeline_mode<synchronous>, transform_indices = @transform_1, window_bounds = array<i64: 32, 128>}, {pipeline_mode = #tpu.pipeline_mode<synchronous>, transform_indices = @transform_2, window_bounds = array<i64: 2, 128>}, {transform_indices = @transform_3, window_bounds = array<i64: 8, 32>}]} {
    %c0_i32 = arith.constant 0 : i32
    %0 = arith.cmpi eq, %arg1, %c0_i32 : i32
    %1 = arith.extui %0 : i1 to i32
    %c0_i32_0 = arith.constant 0 : i32
    %2 = arith.cmpi ne, %1, %c0_i32_0 : i32
    scf.if %2 {
      %cst_14 = arith.constant 0.000000e+00 : f32
      %26 = vector.broadcast %cst_14 : f32 to vector<8x32xf32>
      %c0_15 = arith.constant 0 : index
      %c0_16 = arith.constant 0 : index
      %27 = vector.load %arg6[%c0_15, %c0_16] : memref<8x32xf32, #tpu.memory_space<vmem>>, vector<8x32xf32>
      tpu.vector_store %arg6[%c0_15, %c0_16], %26 {strides = array<i32>} : memref<8x32xf32, #tpu.memory_space<vmem>>, vector<8x32xf32>,
    } else {
    }
    %c0 = arith.constant 0 : index
    %c0_1 = arith.constant 0 : index
    %3 = vector.load %arg2[%c0, %c0_1] : memref<8x32xf32, #tpu.memory_space<vmem>>, vector<8x32xf32>
    %4 = arith.truncf %3 : vector<8x32xf32> to vector<8x32xbf16>
    %c0_2 = arith.constant 0 : index
    %c0_3 = arith.constant 0 : index
    %5 = vector.load %arg3[%c0_2, %c0_3] : memref<32x128xbf16, #tpu.memory_space<vmem>>, vector<32x128xbf16>
    %c0_4 = arith.constant 0 : index
    %c0_5 = arith.constant 0 : index
    %6 = vector.load %arg4[%c0_4, %c0_5] : memref<2x128xf32, #tpu.memory_space<vmem>>, vector<2x128xf32>
    %cst = arith.constant dense<0.000000e+00> : vector<8x128xf32>
    %7 = tpu.matmul %4, %5, %cst {dimension_numbers = #tpu.dot_dimension_numbers<[1], [0], [0], [1], [0, 0, 1, 1], [], []>} : vector<8x32xbf16>, vector<32x128xbf16>, vector<8x128xf32> -> vector<8x128xf32>
    %8 = vector.extract_strided_slice %6 {offsets = [0, 0], sizes = [1, 128], strides = [1, 1]} : vector<2x128xf32> to vector<1x128xf32>
    %9 = vector.broadcast %8 : vector<1x128xf32> to vector<8x128xf32>
    %10 = arith.addf %7, %9 : vector<8x128xf32>
    %11 = math.tanh %10 : vector<8x128xf32>
    %12 = arith.mulf %11, %11 : vector<8x128xf32>
    %cst_6 = arith.constant 1.000000e+00 : f32
    %13 = vector.broadcast %cst_6 : f32 to vector<8x128xf32>
    %14 = arith.subf %13, %12 : vector<8x128xf32>
    %15 = vector.extract_strided_slice %6 {offsets = [1, 0], sizes = [1, 128], strides = [1, 1]} : vector<2x128xf32> to vector<1x128xf32>
    %16 = vector.broadcast %15 : vector<1x128xf32> to vector<8x128xf32>
    %17 = arith.mulf %14, %16 : vector<8x128xf32>
    %c0_7 = arith.constant 0 : index
    %c0_8 = arith.constant 0 : index
    %18 = vector.load %arg6[%c0_7, %c0_8] : memref<8x32xf32, #tpu.memory_space<vmem>>, vector<8x32xf32>
    %19 = arith.truncf %17 : vector<8x128xf32> to vector<8x128xbf16>
    %cst_9 = arith.constant dense<0.000000e+00> : vector<8x32xf32>
    %20 = tpu.matmul %19, %5, %cst_9 {dimension_numbers = #tpu.dot_dimension_numbers<[1], [1], [0], [0], [0, 0, 1, 0], [], []>} : vector<8x128xbf16>, vector<32x128xbf16>, vector<8x32xf32> -> vector<8x32xf32>
    %21 = arith.addf %18, %20 : vector<8x32xf32>
    %c0_10 = arith.constant 0 : index
    %c0_11 = arith.constant 0 : index
    %22 = vector.load %arg6[%c0_10, %c0_11] : memref<8x32xf32, #tpu.memory_space<vmem>>, vector<8x32xf32>
    tpu.vector_store %arg6[%c0_10, %c0_11], %21 {strides = array<i32>} : memref<8x32xf32, #tpu.memory_space<vmem>>, vector<8x32xf32>,
    %c0_i32_12 = arith.constant 0 : i32
    %23 = arith.cmpi eq, %arg1, %c0_i32_12 : i32
    %24 = arith.extui %23 : i1 to i32
    %c0_i32_13 = arith.constant 0 : i32
    %25 = arith.cmpi ne, %24, %c0_i32_13 : i32
    scf.if %25 {
      %c0_14 = arith.constant 0 : index
      %c0_15 = arith.constant 0 : index
      %26 = vector.load %arg6[%c0_14, %c0_15] : memref<8x32xf32, #tpu.memory_space<vmem>>, vector<8x32xf32>
      %c0_16 = arith.constant 0 : index
      %c0_17 = arith.constant 0 : index
      %27 = vector.load %arg5[%c0_16, %c0_17] : memref<8x32xf32, #tpu.memory_space<vmem>>, vector<8x32xf32>
      tpu.vector_store %arg5[%c0_16, %c0_17], %26 {strides = array<i32>} : memref<8x32xf32, #tpu.memory_space<vmem>>, vector<8x32xf32>,
    } else {
    }
    return
  }
  func.func @transform_0(%arg0: i32, %arg1: i32) -> (i32, i32) {
    %c0_i32 = arith.constant 0 : i32
    %c0_i32_0 = arith.constant 0 : i32
    return %arg0, %c0_i32 : i32, i32
  }
  func.func @transform_1(%arg0: i32, %arg1: i32) -> (i32, i32) {
    %c0_i32 = arith.constant 0 : i32
    %c0_i32_0 = arith.constant 0 : i32
    return %c0_i32, %arg1 : i32, i32
  }
  func.func @transform_2(%arg0: i32, %arg1: i32) -> (i32, i32) {
    %c0_i32 = arith.constant 0 : i32
    %c0_i32_0 = arith.constant 0 : i32
    return %c0_i32, %arg1 : i32, i32
  }
  func.func @transform_3(%arg0: i32, %arg1: i32) -> (i32, i32) {
    %c0_i32 = arith.constant 0 : i32
    %c0_i32_0 = arith.constant 0 : i32
    return %arg0, %c0_i32 : i32, i32
  }
}

module attributes {stable_mosaic.version = 11 : i64} {
  func.func @gradnet_kernel(%arg0: i32, %arg1: i32, %arg2: memref<8x32xf32, #tpu.memory_space<vmem>>, %arg3: memref<32x128xbf16, #tpu.memory_space<vmem>>, %arg4: memref<2x128xf32, #tpu.memory_space<vmem>>, %arg5: memref<8x32xf32, #tpu.memory_space<vmem>>, %arg6: memref<8x32xf32, #tpu.memory_space<vmem>>) attributes {dimension_semantics = [#tpu.dimension_semantics<parallel>, #tpu.dimension_semantics<arbitrary>], iteration_bounds = array<i64: 1, 1>, scalar_prefetch = 0 : i64, scratch_operands = 1 : i64, tpu.core_type = #tpu.core_type<tc>, window_params = [{transform_indices = @transform_0, window_bounds = array<i64: 8, 32>}, {transform_indices = @transform_1, window_bounds = array<i64: 32, 128>}, {transform_indices = @transform_2, window_bounds = array<i64: 2, 128>}, {transform_indices = @transform_3, window_bounds = array<i64: 8, 32>}]} {
    %c0_i32 = arith.constant 0 : i32
    %0 = arith.cmpi eq, %arg1, %c0_i32 : i32
    %1 = arith.extui %0 : i1 to i32
    %c0_i32_0 = arith.constant 0 : i32
    %2 = arith.cmpi ne, %1, %c0_i32_0 : i32
    scf.if %2 {
      %cst_14 = arith.constant 0.000000e+00 : f32
      %26 = vector.broadcast %cst_14 : f32 to vector<8x32xf32>
      %c0_15 = arith.constant 0 : index
      %c0_16 = arith.constant 0 : index
      %27 = vector.load %arg6[%c0_15, %c0_16] : memref<8x32xf32, #tpu.memory_space<vmem>>, vector<8x32xf32>
      tpu.vector_store %arg6[%c0_15, %c0_16], %26 {strides = array<i32>} : memref<8x32xf32, #tpu.memory_space<vmem>>, vector<8x32xf32>,
    } else {
    }
    %c0 = arith.constant 0 : index
    %c0_1 = arith.constant 0 : index
    %3 = vector.load %arg2[%c0, %c0_1] : memref<8x32xf32, #tpu.memory_space<vmem>>, vector<8x32xf32>
    %4 = arith.truncf %3 : vector<8x32xf32> to vector<8x32xbf16>
    %c0_2 = arith.constant 0 : index
    %c0_3 = arith.constant 0 : index
    %5 = vector.load %arg3[%c0_2, %c0_3] : memref<32x128xbf16, #tpu.memory_space<vmem>>, vector<32x128xbf16>
    %c0_4 = arith.constant 0 : index
    %c0_5 = arith.constant 0 : index
    %6 = vector.load %arg4[%c0_4, %c0_5] : memref<2x128xf32, #tpu.memory_space<vmem>>, vector<2x128xf32>
    %cst = arith.constant dense<0.000000e+00> : vector<8x128xf32>
    %7 = tpu.matmul %4, %5, %cst {dimension_numbers = #tpu.dot_dimension_numbers<[1], [0], [0], [1], [0, 0, 1, 1], [], []>} : vector<8x32xbf16>, vector<32x128xbf16>, vector<8x128xf32> -> vector<8x128xf32>
    %8 = vector.extract_strided_slice %6 {offsets = [0, 0], sizes = [1, 128], strides = [1, 1]} : vector<2x128xf32> to vector<1x128xf32>
    %9 = vector.broadcast %8 : vector<1x128xf32> to vector<8x128xf32>
    %10 = arith.addf %7, %9 : vector<8x128xf32>
    %11 = math.tanh %10 : vector<8x128xf32>
    %12 = arith.mulf %11, %11 : vector<8x128xf32>
    %cst_6 = arith.constant 1.000000e+00 : f32
    %13 = vector.broadcast %cst_6 : f32 to vector<8x128xf32>
    %14 = arith.subf %13, %12 : vector<8x128xf32>
    %15 = vector.extract_strided_slice %6 {offsets = [1, 0], sizes = [1, 128], strides = [1, 1]} : vector<2x128xf32> to vector<1x128xf32>
    %16 = vector.broadcast %15 : vector<1x128xf32> to vector<8x128xf32>
    %17 = arith.mulf %14, %16 : vector<8x128xf32>
    %c0_7 = arith.constant 0 : index
    %c0_8 = arith.constant 0 : index
    %18 = vector.load %arg6[%c0_7, %c0_8] : memref<8x32xf32, #tpu.memory_space<vmem>>, vector<8x32xf32>
    %19 = arith.truncf %17 : vector<8x128xf32> to vector<8x128xbf16>
    %cst_9 = arith.constant dense<0.000000e+00> : vector<8x32xf32>
    %20 = tpu.matmul %19, %5, %cst_9 {dimension_numbers = #tpu.dot_dimension_numbers<[1], [1], [0], [0], [0, 0, 1, 0], [], []>} : vector<8x128xbf16>, vector<32x128xbf16>, vector<8x32xf32> -> vector<8x32xf32>
    %21 = arith.addf %18, %20 : vector<8x32xf32>
    %c0_10 = arith.constant 0 : index
    %c0_11 = arith.constant 0 : index
    %22 = vector.load %arg6[%c0_10, %c0_11] : memref<8x32xf32, #tpu.memory_space<vmem>>, vector<8x32xf32>
    tpu.vector_store %arg6[%c0_10, %c0_11], %21 {strides = array<i32>} : memref<8x32xf32, #tpu.memory_space<vmem>>, vector<8x32xf32>,
    %c0_i32_12 = arith.constant 0 : i32
    %23 = arith.cmpi eq, %arg1, %c0_i32_12 : i32
    %24 = arith.extui %23 : i1 to i32
    %c0_i32_13 = arith.constant 0 : i32
    %25 = arith.cmpi ne, %24, %c0_i32_13 : i32
    scf.if %25 {
      %c0_14 = arith.constant 0 : index
      %c0_15 = arith.constant 0 : index
      %26 = vector.load %arg6[%c0_14, %c0_15] : memref<8x32xf32, #tpu.memory_space<vmem>>, vector<8x32xf32>
      %c0_16 = arith.constant 0 : index
      %c0_17 = arith.constant 0 : index
      %27 = vector.load %arg5[%c0_16, %c0_17] : memref<8x32xf32, #tpu.memory_space<vmem>>, vector<8x32xf32>
      tpu.vector_store %arg5[%c0_16, %c0_17], %26 {strides = array<i32>} : memref<8x32xf32, #tpu.memory_space<vmem>>, vector<8x32xf32>,
    } else {
    }
    return
  }
  func.func @transform_0(%arg0: i32, %arg1: i32) -> (i32, i32) {
    %c0_i32 = arith.constant 0 : i32
    %c0_i32_0 = arith.constant 0 : i32
    return %arg0, %c0_i32 : i32, i32
  }
  func.func @transform_1(%arg0: i32, %arg1: i32) -> (i32, i32) {
    %c0_i32 = arith.constant 0 : i32
    %c0_i32_0 = arith.constant 0 : i32
    return %c0_i32, %arg1 : i32, i32
  }
  func.func @transform_2(%arg0: i32, %arg1: i32) -> (i32, i32) {
    %c0_i32 = arith.constant 0 : i32
    %c0_i32_0 = arith.constant 0 : i32
    return %c0_i32, %arg1 : i32, i32
  }
  func.func @transform_3(%arg0: i32, %arg1: i32) -> (i32, i32) {
    %c0_i32 = arith.constant 0 : i32
    %c0_i32_0 = arith.constant 0 : i32
    return %arg0, %c0_i32 : i32, i32
  }
}

</mosaic_0001>

<bundles_post_ra>
// kernel: tpu_custom_call.1
= control target key start
LH: loop header
LB: loop body
LE: loop exit
PB: predicated region body
PF: predicated region fallthrough
CT: control target
= control target key end

     0   :  { %8 = vsyncpa [#allocation4], 0  ;;  %s373_s0 = inlined_call_operand.hbm [shape: f32[8,32], index: 0, kind: input, shape index: {}]   ;;  %s374_s1 = inlined_call_operand.hbm [shape: bf16[32,128], index: 1, kind: input, shape index: {}]   ;;  %s375_s2 = inlined_call_operand.vmem [shape: f32[2,128], index: 2, kind: input, shape index: {}]   ;;  %s376_s3 = inlined_call_operand.hbm [shape: f32[8,32], index: 3, kind: output, shape index: {}]  }
   0x1   :  { %9 = vsyncpa [#allocation7], 0 }
   0x2   :  { %10 = vsyncpa [#allocation5], 0  ;;  %s296_s12 = smov [#allocation3]   ;;  %s297_s14 = smov [#allocation6]  }
   0x3   :  { %s17_s13 = sshll.u32 %s296_s12, 4  ;;  %s26_s15 = sshll.u32 %s297_s14, 4  ;;  %s18_s13 = int_to_ptr.vmem [resolvable:$true] %s17_s13  ;;  %s323_s15 = int_to_ptr.vmem [resolvable:$true] %s26_s15 }
   0x4   :  { %s224_s18 = scalar_lea.hbm %s373_s0, 128 }
   0x5   :  { %p225_p0 = scmp.ne.s32.totalorder %s373_s0, %s224_s18  ;;  %p228_p1 = scmp.lt.u32.totalorder %s224_s18, %s373_s0 }
   0x7   :  { %p230_p2 = pnand %p228_p1, %p225_p0 }
   0x9   :  { %233 = shalt.err (!%p230_p2)
}
   0xa   :  { %s234_s23 = scalar_lea.vmem %s18_s13, 128  ;;  %p239_p4 = scmp.lt.s32.totalorder %s18_s13, %s18_s13 }
   0xb   :  { %p235_p3 = scmp.ne.s32.totalorder %s18_s13, %s234_s23  ;;  %p240_p5 = scmp.lt.s32.totalorder %s234_s23, %s234_s23 }
   0xd   :  { %p241_p6 = por %p240_p5, %p239_p4 }
   0xf   :  { %p242_p7 = pnand %p241_p6, %p235_p3 }
  0x11   :  { %245 = shalt.err (!%p242_p7)
}
  0x12   :  { %20 = dma.hbm_to_vmem [thread:$0]  %s373_s0, 128, %s18_s13, [#allocation4]  }
  0x13   :  { %s246_s28 = scalar_lea.hbm %s374_s1, 256 }
  0x14   :  { %p247_p8 = scmp.ne.s32.totalorder %s374_s1, %s246_s28  ;;  %p250_p9 = scmp.lt.u32.totalorder %s246_s28, %s374_s1 }
  0x16   :  { %p252_p10 = pnand %p250_p9, %p247_p8 }
  0x18   :  { %255 = shalt.err (!%p252_p10)
}
  0x19   :  { %s256_s6 = scalar_lea.vmem %s323_s15, 256  ;;  %p261_p12 = scmp.lt.s32.totalorder %s323_s15, %s323_s15 }
  0x1a   :  { %p257_p11 = scmp.ne.s32.totalorder %s323_s15, %s256_s6  ;;  %p262_p13 = scmp.lt.s32.totalorder %s256_s6, %s256_s6 }
  0x1c   :  { %p263_p0 = por %p262_p13, %p261_p12 }
  0x1e   :  { %p264_p1 = pnand %p263_p0, %p257_p11 }
  0x20   :  { %267 = shalt.err (!%p264_p1)
}
  0x21   :  { %s298_s0 = smov 64   ;;  %s299_s7 = smov 4  }
  0x22   :  { %32 = dma.hbm_to_vmem [thread:$0]  %s374_s1, 256, %s323_s15, [#allocation7], %s298_s0, %s298_s0, %s299_s7  }
  0x23   :  { %290 = dma.done.wait [#allocation4], 128  }
  0x24   :  { %291 = vsyncadd [#allocation4], 4294967168 }
  0x25   :  { %292 = dma.done.wait [#allocation7], 256  }
  0x26   :  { %293 = vsyncadd [#allocation7], 4294967040  ;;  %vm46_vm0 = vcmask 261120   ;;  %v300_v0 = vmov 0.0   ;;  %vm301_vm1 = vmmov 0   ;;  %v220_v1 = vld [vmem:[#allocation6] sm:$0xff]   ;;  %v55_v5 = vlaneseq }
  0x27   :  { %197 = vmatprep.subr.bf16.mxu0 %v300_v0  ;;  %201 = vmatprep.mubr.msk.bf16.mxu0 %vm301_vm1, %v300_v0  ;;  %47 = vst.msk [vmem:[#allocation2] sm:$0xff] %vm46_vm0, %v300_v0  ;;  %v221_v2 = vld [vmem:[#allocation6 + $0x8] sm:$0xff]   ;;  %v48_v3 = vld [vmem:[#allocation3] sm:$0xff]  ;;  %v54_v8 = vld [vmem:[%s375_s2] sm:$0x3]  ;;  %s302_s2 = smov [#allocation8]  }
  0x28   :  { %205 = vmatprep.subr.bf16.mxu1 %v300_v0  ;;  %209 = vmatprep.mubr.msk.bf16.mxu1 %vm301_vm1, %v300_v0  ;;  %v49_v4 = vpack.c.bf16 %v48_v3, %v48_v3  ;;  %v56_v6 = vshrl.u32 %v55_v5, 7  ;;  %s178_s11 = sshll.u32 %s302_s2, 4  ;;  %s179_s11 = int_to_ptr.vmem [resolvable:$true] %s178_s11 }
  0x29   :  { %198 = vmatpush3.bf16.msra.mxu0 %v220_v1  ;;  %206 = vmatpush3.bf16.xpose.msra.mxu1 %v220_v1  ;;  %s268_s12 = scalar_lea.vmem %s179_s11, 128  ;;  %p273_p3 = scmp.lt.s32.totalorder %s179_s11, %s179_s11 }
  0x2a   :  { %199 = vmatprep.subr.bf16.mxu0 %v300_v0  ;;  %207 = vmatprep.subr.bf16.mxu1 %v300_v0  ;;  %v57_v7 = vsub.s32 0, %v56_v6  ;;  %v120_v15 = vsub.s32 1, %v56_v6  ;;  %p269_p2 = scmp.ne.s32.totalorder %s179_s11, %s268_s12  ;;  %p274_p4 = scmp.lt.s32.totalorder %s268_s12, %s268_s12 }
  0x2c   :  { %v58_v9 = vrot.slane %v54_v8, %v57_v7  ;;  %v121_v18 = vrot.slane %v54_v8, %v120_v15  ;;  %p275_p5 = por %p274_p4, %p273_p3 }
  0x2d   :  { %200 = vmatpush3.bf16.msra.mxu0 %v221_v2 }
  0x2e   :  { %v123_v22 = vld [vmem:[#allocation2] sm:$0xff]  ;;  %p276_p6 = pnand %p275_p5, %p269_p2 }
  0x30   :  { %202 = vmatmul.mubr.msk.bf16.vlgmr.msra.gmra.mrb[0].mxu0 %vm46_vm0, %v49_v4 }
  0x31   :  { %208 = vmatpush3.bf16.xpose.msra.mxu1 %v221_v2 }
 0x103   :  { %v109_v10 = vpop.f32.mrb[0].mxu0 }
 0x104   :  { %v110_v11 = vadd.f32 %v109_v10, %v58_v9  ;;  %v203_v12 = vpop.f32.mrb[1].mxu0 }
 0x105   :  { %v112_v13 = vpop.f32.mrb[2].mxu0 }
 0x106   :  { %222 = vtanh.f32 %v110_v11  ;;  %v204_v14 = vpop.f32.mrb[3].mxu0 }
 0x110   :  { %v223_v16 = vpop.eup %222 }
 0x111   :  { %v116_v17 = vmul.f32 %v223_v16, %v223_v16 }
 0x113   :  { %v117_v19 = vsub.f32 1.0, %v116_v17 }
 0x115   :  { %v122_v20 = vmul.f32 %v121_v18, %v117_v19 }
 0x117   :  { %v124_v21 = vpack.c.bf16 %v122_v20, %v122_v20 }
 0x119   :  { %210 = vmatmul.mubr.bf16.vlgmr.msra.gmra.mrb[0].mxu1 %v124_v21 }
 0x1ec   :  { %v159_v23 = vpop.f32.mrb[0].mxu1 }
 0x1ed   :  { %v165_v24 = vadd.f32 %v159_v23, %v123_v22  ;;  %v211_v25 = vpop.f32.mrb[1].mxu1 }
 0x1ee   :  { %v162_v26 = vpop.f32.mrb[2].mxu1 }
 0x1ef   :  { %166 = vst.msk [vmem:[#allocation2] sm:$0xff] %vm46_vm0, %v165_v24  ;;  %v212_v27 = vpop.f32.mrb[3].mxu1 }
 0x1f6   :  { %v170_v28 = vld [vmem:[#allocation2] sm:$0xff] }
 0x1f7   :  { %171 = vst.msk [vmem:[#allocation8] sm:$0xff] %vm46_vm0, %v170_v28 }
 0x1f8   :  { %279 = shalt.err (!%p276_p6)
}
 0x1f9   :  { %s280_s15 = scalar_lea.hbm %s376_s3, 128 }
 0x1fa   :  { %p281_p7 = scmp.ne.s32.totalorder %s376_s3, %s280_s15  ;;  %p284_p8 = scmp.lt.u32.totalorder %s280_s15, %s376_s3 }
 0x1fc   :  { %p286_p9 = pnand %p284_p8, %p281_p7 }
 0x1fe   :  { %289 = shalt.err (!%p286_p9)
}
 0x1ff   :  { %181 = dma.vmem_to_hbm [thread:$0]  %s179_s11, 128, %s376_s3, [#allocation5]  }
 0x200   :  { %294 = dma.done.wait [#allocation5], 128  }
 0x201   :  { %295 = vsyncadd [#allocation5], 4294967168 }
 0x202   :  { %185 = vsyncpa [#allocation4], 1 }
 0x203   :  { %186 = vsyncpa [#allocation7], 1 }
 0x204   :  { %187 = vsyncpa [#allocation5], 1 }

// kernel: tpu_custom_call.1
= control target key start
LH: loop header
LB: loop body
LE: loop exit
PB: predicated region body
PF: predicated region fallthrough
CT: control target
= control target key end

     0   :  { %8 = vsyncpa [#allocation4], 0  ;;  %s373_s0 = inlined_call_operand.hbm [shape: f32[8,32], index: 0, kind: input, shape index: {}]   ;;  %s374_s1 = inlined_call_operand.hbm [shape: bf16[32,128], index: 1, kind: input, shape index: {}]   ;;  %s375_s2 = inlined_call_operand.vmem [shape: f32[2,128], index: 2, kind: input, shape index: {}]   ;;  %s376_s3 = inlined_call_operand.hbm [shape: f32[8,32], index: 3, kind: output, shape index: {}]  }
   0x1   :  { %9 = vsyncpa [#allocation7], 0 }
   0x2   :  { %10 = vsyncpa [#allocation5], 0  ;;  %s296_s12 = smov [#allocation3]   ;;  %s297_s14 = smov [#allocation6]  }
   0x3   :  { %s17_s13 = sshll.u32 %s296_s12, 4  ;;  %s26_s15 = sshll.u32 %s297_s14, 4  ;;  %s18_s13 = int_to_ptr.vmem [resolvable:$true] %s17_s13  ;;  %s323_s15 = int_to_ptr.vmem [resolvable:$true] %s26_s15 }
   0x4   :  { %s224_s18 = scalar_lea.hbm %s373_s0, 128 }
   0x5   :  { %p225_p0 = scmp.ne.s32.totalorder %s373_s0, %s224_s18  ;;  %p228_p1 = scmp.lt.u32.totalorder %s224_s18, %s373_s0 }
   0x7   :  { %p230_p2 = pnand %p228_p1, %p225_p0 }
   0x9   :  { %233 = shalt.err (!%p230_p2)
}
   0xa   :  { %s234_s23 = scalar_lea.vmem %s18_s13, 128  ;;  %p239_p4 = scmp.lt.s32.totalorder %s18_s13, %s18_s13 }
   0xb   :  { %p235_p3 = scmp.ne.s32.totalorder %s18_s13, %s234_s23  ;;  %p240_p5 = scmp.lt.s32.totalorder %s234_s23, %s234_s23 }
   0xd   :  { %p241_p6 = por %p240_p5, %p239_p4 }
   0xf   :  { %p242_p7 = pnand %p241_p6, %p235_p3 }
  0x11   :  { %245 = shalt.err (!%p242_p7)
}
  0x12   :  { %20 = dma.hbm_to_vmem [thread:$0]  %s373_s0, 128, %s18_s13, [#allocation4]  }
  0x13   :  { %s246_s28 = scalar_lea.hbm %s374_s1, 256 }
  0x14   :  { %p247_p8 = scmp.ne.s32.totalorder %s374_s1, %s246_s28  ;;  %p250_p9 = scmp.lt.u32.totalorder %s246_s28, %s374_s1 }
  0x16   :  { %p252_p10 = pnand %p250_p9, %p247_p8 }
  0x18   :  { %255 = shalt.err (!%p252_p10)
}
  0x19   :  { %s256_s6 = scalar_lea.vmem %s323_s15, 256  ;;  %p261_p12 = scmp.lt.s32.totalorder %s323_s15, %s323_s15 }
  0x1a   :  { %p257_p11 = scmp.ne.s32.totalorder %s323_s15, %s256_s6  ;;  %p262_p13 = scmp.lt.s32.totalorder %s256_s6, %s256_s6 }
  0x1c   :  { %p263_p0 = por %p262_p13, %p261_p12 }
  0x1e   :  { %p264_p1 = pnand %p263_p0, %p257_p11 }
  0x20   :  { %267 = shalt.err (!%p264_p1)
}
  0x21   :  { %s298_s0 = smov 64   ;;  %s299_s7 = smov 4  }
  0x22   :  { %32 = dma.hbm_to_vmem [thread:$0]  %s374_s1, 256, %s323_s15, [#allocation7], %s298_s0, %s298_s0, %s299_s7  }
  0x23   :  { %290 = dma.done.wait [#allocation4], 128  }
  0x24   :  { %291 = vsyncadd [#allocation4], 4294967168 }
  0x25   :  { %292 = dma.done.wait [#allocation7], 256  }
  0x26   :  { %293 = vsyncadd [#allocation7], 4294967040  ;;  %vm46_vm0 = vcmask 261120   ;;  %v300_v0 = vmov 0.0   ;;  %vm301_vm1 = vmmov 0   ;;  %v220_v1 = vld [vmem:[#allocation6] sm:$0xff]   ;;  %v55_v5 = vlaneseq }
  0x27   :  { %197 = vmatprep.subr.bf16.mxu0 %v300_v0  ;;  %201 = vmatprep.mubr.msk.bf16.mxu0 %vm301_vm1, %v300_v0  ;;  %47 = vst.msk [vmem:[#allocation2] sm:$0xff] %vm46_vm0, %v300_v0  ;;  %v221_v2 = vld [vmem:[#allocation6 + $0x8] sm:$0xff]   ;;  %v48_v3 = vld [vmem:[#allocation3] sm:$0xff]  ;;  %v54_v8 = vld [vmem:[%s375_s2] sm:$0x3]  ;;  %s302_s2 = smov [#allocation8]  }
  0x28   :  { %205 = vmatprep.subr.bf16.mxu1 %v300_v0  ;;  %209 = vmatprep.mubr.msk.bf16.mxu1 %vm301_vm1, %v300_v0  ;;  %v49_v4 = vpack.c.bf16 %v48_v3, %v48_v3  ;;  %v56_v6 = vshrl.u32 %v55_v5, 7  ;;  %s178_s11 = sshll.u32 %s302_s2, 4  ;;  %s179_s11 = int_to_ptr.vmem [resolvable:$true] %s178_s11 }
  0x29   :  { %198 = vmatpush3.bf16.msra.mxu0 %v220_v1  ;;  %206 = vmatpush3.bf16.xpose.msra.mxu1 %v220_v1  ;;  %s268_s12 = scalar_lea.vmem %s179_s11, 128  ;;  %p273_p3 = scmp.lt.s32.totalorder %s179_s11, %s179_s11 }
  0x2a   :  { %199 = vmatprep.subr.bf16.mxu0 %v300_v0  ;;  %207 = vmatprep.subr.bf16.mxu1 %v300_v0  ;;  %v57_v7 = vsub.s32 0, %v56_v6  ;;  %v120_v15 = vsub.s32 1, %v56_v6  ;;  %p269_p2 = scmp.ne.s32.totalorder %s179_s11, %s268_s12  ;;  %p274_p4 = scmp.lt.s32.totalorder %s268_s12, %s268_s12 }
  0x2c   :  { %v58_v9 = vrot.slane %v54_v8, %v57_v7  ;;  %v121_v18 = vrot.slane %v54_v8, %v120_v15  ;;  %p275_p5 = por %p274_p4, %p273_p3 }
  0x2d   :  { %200 = vmatpush3.bf16.msra.mxu0 %v221_v2 }
  0x2e   :  { %v123_v22 = vld [vmem:[#allocation2] sm:$0xff]  ;;  %p276_p6 = pnand %p275_p5, %p269_p2 }
  0x30   :  { %202 = vmatmul.mubr.msk.bf16.vlgmr.msra.gmra.mrb[0].mxu0 %vm46_vm0, %v49_v4 }
  0x31   :  { %208 = vmatpush3.bf16.xpose.msra.mxu1 %v221_v2 }
 0x103   :  { %v109_v10 = vpop.f32.mrb[0].mxu0 }
 0x104   :  { %v110_v11 = vadd.f32 %v109_v10, %v58_v9  ;;  %v203_v12 = vpop.f32.mrb[1].mxu0 }
 0x105   :  { %v112_v13 = vpop.f32.mrb[2].mxu0 }
 0x106   :  { %222 = vtanh.f32 %v110_v11  ;;  %v204_v14 = vpop.f32.mrb[3].mxu0 }
 0x110   :  { %v223_v16 = vpop.eup %222 }
 0x111   :  { %v116_v17 = vmul.f32 %v223_v16, %v223_v16 }
 0x113   :  { %v117_v19 = vsub.f32 1.0, %v116_v17 }
 0x115   :  { %v122_v20 = vmul.f32 %v121_v18, %v117_v19 }
 0x117   :  { %v124_v21 = vpack.c.bf16 %v122_v20, %v122_v20 }
 0x119   :  { %210 = vmatmul.mubr.bf16.vlgmr.msra.gmra.mrb[0].mxu1 %v124_v21 }
 0x1ec   :  { %v159_v23 = vpop.f32.mrb[0].mxu1 }
 0x1ed   :  { %v165_v24 = vadd.f32 %v159_v23, %v123_v22  ;;  %v211_v25 = vpop.f32.mrb[1].mxu1 }
 0x1ee   :  { %v162_v26 = vpop.f32.mrb[2].mxu1 }
 0x1ef   :  { %166 = vst.msk [vmem:[#allocation2] sm:$0xff] %vm46_vm0, %v165_v24  ;;  %v212_v27 = vpop.f32.mrb[3].mxu1 }
 0x1f6   :  { %v170_v28 = vld [vmem:[#allocation2] sm:$0xff] }
 0x1f7   :  { %171 = vst.msk [vmem:[#allocation8] sm:$0xff] %vm46_vm0, %v170_v28 }
 0x1f8   :  { %279 = shalt.err (!%p276_p6)
}
 0x1f9   :  { %s280_s15 = scalar_lea.hbm %s376_s3, 128 }
 0x1fa   :  { %p281_p7 = scmp.ne.s32.totalorder %s376_s3, %s280_s15  ;;  %p284_p8 = scmp.lt.u32.totalorder %s280_s15, %s376_s3 }
 0x1fc   :  { %p286_p9 = pnand %p284_p8, %p281_p7 }
 0x1fe   :  { %289 = shalt.err (!%p286_p9)
}
 0x1ff   :  { %181 = dma.vmem_to_hbm [thread:$0]  %s179_s11, 128, %s376_s3, [#allocation5]  }
 0x200   :  { %294 = dma.done.wait [#allocation5], 128  }
 0x201   :  { %295 = vsyncadd [#allocation5], 4294967168 }
 0x202   :  { %185 = vsyncpa [#allocation4], 1 }
 0x203   :  { %186 = vsyncpa [#allocation7], 1 }
 0x204   :  { %187 = vsyncpa [#allocation5], 1 }

</bundles_post_ra>
